<compile_context>
chip_gen: v7x
topology: tpu7x:2x2x1
jax: 0.10.0
libtpu: 0.0.40
codegen_flags: <defaults>
</compile_context>

<pallas_src>
import functools
import struct

import jax
import jax.numpy as jnp
from jax.experimental import pallas as pl
from jax.experimental.pallas import tpu as pltpu

IGNORE_LABEL = -1
THRESH = 0.7
MIN_KEPT = 100000          # module does max(1, min_kept)
BALANCE_WEIGHTS = (1.0,)   # config.LOSS.BALANCE_WEIGHTS, NUM_OUTPUTS == 1 -> only _ohem_forward

MAX_TILE_HW = 16 * 1024    # pixels per lane-axis block (amortizes per-grid-step overhead)


def _round_up(x, m):
    return ((x + m - 1) // m) * m


def _f32_bits(x):
    """Bit pattern of a float32 as a Python int (monotone in x for x >= 0)."""
    return struct.unpack("<i", struct.pack("<f", float(x)))[0]


INVALID_KEY = _f32_bits(2.0)   # sentinel key for ignored / padded pixels (> bits of any prob)


def _pixel_ce_kernel(logits_ref, tgt_ref, loss_ref, key_ref, *, ignore_label, invalid_key):
    """Per-pixel softmax CE + int32 bit-key of the target-class prob.

    logits_ref: (1, C, T)  -- classes on sublanes, pixels on lanes
    tgt_ref:    (1, 1, T) int32
    loss_ref:   (1, 1, T) f32    (lane-dense output)
    key_ref:    (1, 1, T) int32  (lane-dense output)
    Ignored (and padded) pixels get loss = 0 and key = bits(2.0), so no separate
    `valid` array has to round-trip through HBM.
    """
    logits = logits_ref[...].astype(jnp.float32)               # (1, C, T)
    tgt = tgt_ref[...]                                         # (1, 1, T)
    valid = tgt != ignore_label
    safe_tgt = jnp.where(valid, tgt, 0)                        # tmp_target[tmp==ignore] = 0

    class_ids = jax.lax.broadcasted_iota(jnp.int32, logits.shape, 1)
    onehot = class_ids == safe_tgt                             # (1, C, T) gather via one-hot

    m = jnp.max(logits, axis=1, keepdims=True)                 # (1, 1, T) sublane reduce
    z = logits - m
    denom = jnp.sum(jnp.exp(z), axis=1, keepdims=True)         # (1, 1, T)
    z_t = jnp.sum(jnp.where(onehot, z, 0.0), axis=1, keepdims=True)

    loss = jnp.log(denom) - z_t                                # -log softmax[target]
    prob = jnp.exp(-loss)                                      # softmax prob of target class
    keys = pltpu.bitcast(prob, jnp.int32)                      # monotone key (prob >= 0)

    loss_ref[...] = jnp.where(valid, loss, 0.0)                # CE with ignore_index -> 0
    key_ref[...] = jnp.where(valid, keys, invalid_key)


def _select_mean_kernel(thr_ref, loss_ref, key_ref, sum_ref, cnt_ref):
    """Per-batch-row partial sum / count of losses at pixels with key < threshold bits."""
    @pl.when(pl.program_id(1) == 0)
    def _():
        sum_ref[...] = jnp.zeros_like(sum_ref)
        cnt_ref[...] = jnp.zeros_like(cnt_ref)

    thr_bits = thr_ref[0]                       # int32 scalar from SMEM
    sel = key_ref[...] < thr_bits               # invalid/padded key == bits(2.0) never selected
    sum_ref[...] += jnp.sum(jnp.where(sel, loss_ref[...], 0.0))
    cnt_ref[...] += jnp.sum(sel.astype(jnp.float32))


def ohem_cross_entropy(score, target, *, ignore_label=IGNORE_LABEL,
                       thresh=THRESH, min_kept=MIN_KEPT):
    # score: (N, C, H, W) float logits; target: (N, H, W) int labels
    n, c, h, w = score.shape
    assert target.shape == (n, h, w)
    # TODO(synk): F.interpolate bilinear resize path (score HW != target HW) not implemented;
    # spatial shapes are required to match here.

    hw = h * w
    # Pixels on lanes / classes on sublanes: (N, C, H*W) is a free reshape of NCHW —
    # no wrapper transpose and no extra HBM pass for re-layout.
    logits3d = score.reshape(n, c, hw)
    tgt3d = target.reshape(n, 1, hw).astype(jnp.int32)

    # Large lane tile, bounded so double-buffered blocks stay well within scoped VMEM
    # on every generation (v5e/v6e/v7x).
    vmem_budget = 8 * 1024 * 1024
    tile_cap = max(128, (vmem_budget // (4 * 2 * (c + 3))) // 128 * 128)
    tile_hw = min(MAX_TILE_HW, tile_cap, _round_up(hw, 128))
    hw_pad = _round_up(hw, tile_hw)
    if hw_pad != hw:
        logits3d = jnp.pad(logits3d, ((0, 0), (0, 0), (0, hw_pad - hw)))
        tgt3d = jnp.pad(tgt3d, ((0, 0), (0, 0), (0, hw_pad - hw)),
                        constant_values=ignore_label)
    grid = (n, hw_pad // tile_hw)

    loss, keys = pl.pallas_call(
        functools.partial(_pixel_ce_kernel, ignore_label=ignore_label,
                          invalid_key=INVALID_KEY),
        out_shape=(jax.ShapeDtypeStruct((n, 1, hw_pad), jnp.float32),
                   jax.ShapeDtypeStruct((n, 1, hw_pad), jnp.int32)),
        grid_spec=pltpu.PrefetchScalarGridSpec(
            num_scalar_prefetch=0,
            grid=grid,
            in_specs=[pl.BlockSpec((1, c, tile_hw), lambda b, t: (b, 0, t)),
                      pl.BlockSpec((1, 1, tile_hw), lambda b, t: (b, 0, t))],
            out_specs=[pl.BlockSpec((1, 1, tile_hw), lambda b, t: (b, 0, t)),
                       pl.BlockSpec((1, 1, tile_hw), lambda b, t: (b, 0, t))],
        ),
        compiler_params=pltpu.CompilerParams(
            dimension_semantics=("parallel", "parallel")),
    )(logits3d, tgt3d)

    # ---- OHEM threshold: k-th smallest target-class prob among valid pixels. ----
    # keys are the int32 bit patterns of the (non-negative) probs, so order statistics on
    # probs == order statistics on keys.  Instead of a full O(P log P) sort we binary-search
    # the key: exact k-th order statistic in <= ~24 mem-bound counting passes, and in the
    # common case (k-th prob <= thresh, so threshold == thresh) a single counting pass.
    num_valid = jnp.sum(keys < INVALID_KEY, dtype=jnp.int32)
    # Guard k >= 0 for the all-ignored case (PyTorch would index an empty tensor / NaN).
    kth = jnp.maximum(jnp.minimum(jnp.int32(max(1, min_kept)), num_valid - 1), 0)
    need = kth + 1

    # Search range clamped below at bits(thresh): the final threshold is
    # max(min_value, thresh), so k-th values below thresh are irrelevant.
    lo0 = jnp.int32(_f32_bits(min(max(float(thresh), 0.0), 2.0)))
    hi0 = jnp.int32(INVALID_KEY)

    c_at_thresh = jnp.sum(keys <= lo0, dtype=jnp.int32)

    def _bisect(_):
        def cond(state):
            lo, hi = state
            return lo < hi

        def body(state):
            lo, hi = state
            mid = lo + (hi - lo) // 2
            found = jnp.sum(keys <= mid, dtype=jnp.int32) >= need
            return jnp.where(found, lo, mid + 1), jnp.where(found, mid, hi)

        lo, _ = jax.lax.while_loop(cond, body, (lo0, hi0))
        return lo

    # Early exit: if >= need probs are already <= thresh, threshold is exactly thresh.
    thr_bits = jax.lax.cond(c_at_thresh >= need, lambda _: lo0, _bisect, 0)
    thr_bits = jnp.maximum(thr_bits, lo0)        # threshold = max(min_value, thresh), in bit space

    # Selection / mean pass: per-batch-row partial sums so the batch axis stays
    # "parallel" (both TensorCores contribute on v7x); tile axis is the accumulator.
    sums, cnts = pl.pallas_call(
        _select_mean_kernel,
        out_shape=(jax.ShapeDtypeStruct((n, 1, 128), jnp.float32),
                   jax.ShapeDtypeStruct((n, 1, 128), jnp.float32)),
        grid_spec=pltpu.PrefetchScalarGridSpec(
            num_scalar_prefetch=1,
            grid=grid,
            in_specs=[pl.BlockSpec((1, 1, tile_hw), lambda b, t, thr: (b, 0, t)),
                      pl.BlockSpec((1, 1, tile_hw), lambda b, t, thr: (b, 0, t))],
            out_specs=[pl.BlockSpec((1, 1, 128), lambda b, t, thr: (b, 0, 0)),
                       pl.BlockSpec((1, 1, 128), lambda b, t, thr: (b, 0, 0))],
        ),
        compiler_params=pltpu.CompilerParams(
            dimension_semantics=("parallel", "arbitrary")),
    )(jnp.reshape(thr_bits, (1,)), loss, keys)

    s = jnp.sum(sums[:, 0, 0])
    cnt = jnp.sum(cnts[:, 0, 0])
    # Guard the 0/0 case (all pixels ignored / nothing selected); PyTorch would NaN here.
    return jnp.where(cnt > 0, s / cnt, jnp.float32(0.0))


def ohem_cross_entropy_forward(score, target):
    """Full module forward: sum_i w_i * loss_i (single-output config)."""
    return BALANCE_WEIGHTS[-1] * ohem_cross_entropy(score, target)


def _ref_ohem(score, target):
    """Pure-JAX reference (same math, full sort) for sanity checking the kernels."""
    n, c, h, w = score.shape
    logits = jnp.transpose(score, (0, 2, 3, 1)).reshape(-1, c).astype(jnp.float32)
    tgt = target.reshape(-1)
    valid = tgt != IGNORE_LABEL
    safe = jnp.where(valid, tgt, 0)
    logp = jax.nn.log_softmax(logits, axis=-1)
    losses = -jnp.take_along_axis(logp, safe[:, None], axis=-1)[:, 0]
    probs = jnp.exp(-losses)
    num_valid = jnp.sum(valid).astype(jnp.int32)
    prob_sorted = jnp.sort(jnp.where(valid, probs, jnp.inf))
    kk = jnp.minimum(jnp.int32(max(1, MIN_KEPT)), num_valid - 1)
    thr = jnp.maximum(prob_sorted[kk], jnp.float32(THRESH))
    sel = valid & (probs < thr)
    return jnp.sum(jnp.where(sel, losses, 0.0)) / jnp.sum(sel)


if __name__ == "__main__":
    key = jax.random.PRNGKey(0)
    k1, k2, k3 = jax.random.split(key, 3)
    N, C, H, W = 2, 4, 16, 16
    score = jax.random.normal(k1, (N, C, H, W), jnp.float32)
    target = jax.random.randint(k2, (N, H, W), 0, C, jnp.int32)
    ignore_mask = jax.random.bernoulli(k3, 0.1, (N, H, W))
    target = jnp.where(ignore_mask, IGNORE_LABEL, target)

    fwd = jax.jit(ohem_cross_entropy_forward)
    out = jax.block_until_ready(fwd(score, target))
    ref = jax.block_until_ready(_ref_ohem(score, target))
    assert jnp.allclose(out, ref, rtol=1e-4, atol=1e-5), (out, ref)

    print("KERNEL_OK")
</pallas_src>

<mosaic_0001>
module attributes {stable_mosaic.version = 11 : i64} {
  func.func @_pixel_ce_kernel(%arg0: i32, %arg1: i32, %arg2: memref<1x4x256xf32, #tpu.memory_space<vmem>>, %arg3: memref<1x1x256xi32, #tpu.memory_space<vmem>>, %arg4: memref<1x1x256xf32, #tpu.memory_space<vmem>>, %arg5: memref<1x1x256xi32, #tpu.memory_space<vmem>>) attributes {dimension_semantics = [#tpu.dimension_semantics<parallel>, #tpu.dimension_semantics<parallel>], iteration_bounds = array<i64: 2, 1>, scalar_prefetch = 0 : i64, scratch_operands = 0 : i64, tpu.core_type = #tpu.core_type<tc>, window_params = [{transform_indices = @transform_0, window_bounds = array<i64: 1, 4, 256>}, {transform_indices = @transform_1, window_bounds = array<i64: 1, 1, 256>}, {transform_indices = @transform_2, window_bounds = array<i64: 1, 1, 256>}, {transform_indices = @transform_3, window_bounds = array<i64: 1, 1, 256>}]} {
    %c0 = arith.constant 0 : index
    %c0_0 = arith.constant 0 : index
    %c0_1 = arith.constant 0 : index
    %0 = vector.load %arg2[%c0, %c0_0, %c0_1] : memref<1x4x256xf32, #tpu.memory_space<vmem>>, vector<1x4x256xf32>
    %c0_2 = arith.constant 0 : index
    %c0_3 = arith.constant 0 : index
    %c0_4 = arith.constant 0 : index
    %1 = vector.load %arg3[%c0_2, %c0_3, %c0_4] : memref<1x1x256xi32, #tpu.memory_space<vmem>>, vector<1x1x256xi32>
    %c-1_i32 = arith.constant -1 : i32
    %2 = vector.broadcast %c-1_i32 : i32 to vector<1x1x256xi32>
    %3 = arith.cmpi ne, %1, %2 : vector<1x1x256xi32>
    %c0_i32 = arith.constant 0 : i32
    %4 = vector.broadcast %c0_i32 : i32 to vector<1x1x256xi32>
    %5 = arith.select %3, %1, %4 : vector<1x1x256xi1>, vector<1x1x256xi32>
    %6 = tpu.iota {dimensions = array<i32: 1>} : vector<1x4x256xi32>
    %7 = vector.broadcast %5 : vector<1x1x256xi32> to vector<1x4x256xi32>
    %8 = arith.cmpi eq, %6, %7 : vector<1x4x256xi32>
    %cst = arith.constant dense<0xFF800000> : vector<1x256xf32>
    %9 = vector.multi_reduction <maximumf>, %0, %cst [1] : vector<1x4x256xf32> to vector<1x256xf32>
    %10 = vector.shape_cast %9 : vector<1x256xf32> to vector<1x1x256xf32>
    %11 = vector.broadcast %10 : vector<1x1x256xf32> to vector<1x4x256xf32>
    %12 = arith.subf %0, %11 : vector<1x4x256xf32>
    %13 = math.exp %12 : vector<1x4x256xf32>
    %cst_5 = arith.constant dense<0.000000e+00> : vector<1x256xf32>
    %14 = vector.multi_reduction <add>, %13, %cst_5 [1] : vector<1x4x256xf32> to vector<1x256xf32>
    %15 = vector.shape_cast %14 : vector<1x256xf32> to vector<1x1x256xf32>
    %cst_6 = arith.constant 0.000000e+00 : f32
    %16 = vector.broadcast %cst_6 : f32 to vector<1x4x256xf32>
    %17 = arith.select %8, %12, %16 : vector<1x4x256xi1>, vector<1x4x256xf32>
    %cst_7 = arith.constant dense<0.000000e+00> : vector<1x256xf32>
    %18 = vector.multi_reduction <add>, %17, %cst_7 [1] : vector<1x4x256xf32> to vector<1x256xf32>
    %19 = vector.shape_cast %18 : vector<1x256xf32> to vector<1x1x256xf32>
    %20 = math.log %15 : vector<1x1x256xf32>
    %21 = arith.subf %20, %19 : vector<1x1x256xf32>
    %cst_8 = arith.constant 0.000000e+00 : f32
    %22 = vector.broadcast %cst_8 : f32 to vector<1x1x256xf32>
    %23 = arith.subf %22, %21 : vector<1x1x256xf32>
    %24 = math.exp %23 : vector<1x1x256xf32>
    %25 = tpu.bitcast %24 : vector<1x1x256xf32> -> vector<1x1x256xi32>
    %cst_9 = arith.constant 0.000000e+00 : f32
    %26 = vector.broadcast %cst_9 : f32 to vector<1x1x256xf32>
    %27 = arith.select %3, %21, %26 : vector<1x1x256xi1>, vector<1x1x256xf32>
    %c0_10 = arith.constant 0 : index
    %c0_11 = arith.constant 0 : index
    %c0_12 = arith.constant 0 : index
    %28 = vector.load %arg4[%c0_10, %c0_11, %c0_12] : memref<1x1x256xf32, #tpu.memory_space<vmem>>, vector<1x1x256xf32>
    tpu.vector_store %arg4[%c0_10, %c0_11, %c0_12], %27 {strides = array<i32>} : memref<1x1x256xf32, #tpu.memory_space<vmem>>, vector<1x1x256xf32>,
    %c1073741824_i32 = arith.constant 1073741824 : i32
    %29 = vector.broadcast %c1073741824_i32 : i32 to vector<1x1x256xi32>
    %30 = arith.select %3, %25, %29 : vector<1x1x256xi1>, vector<1x1x256xi32>
    %c0_13 = arith.constant 0 : index
    %c0_14 = arith.constant 0 : index
    %c0_15 = arith.constant 0 : index
    %31 = vector.load %arg5[%c0_13, %c0_14, %c0_15] : memref<1x1x256xi32, #tpu.memory_space<vmem>>, vector<1x1x256xi32>
    tpu.vector_store %arg5[%c0_13, %c0_14, %c0_15], %30 {strides = array<i32>} : memref<1x1x256xi32, #tpu.memory_space<vmem>>, vector<1x1x256xi32>,
    return
  }
  func.func @transform_0(%arg0: i32, %arg1: i32) -> (i32, i32, i32) {
    %c0_i32 = arith.constant 0 : i32
    %c0_i32_0 = arith.constant 0 : i32
    return %arg0, %c0_i32, %arg1 : i32, i32, i32
  }
  func.func @transform_1(%arg0: i32, %arg1: i32) -> (i32, i32, i32) {
    %c0_i32 = arith.constant 0 : i32
    %c0_i32_0 = arith.constant 0 : i32
    return %arg0, %c0_i32, %arg1 : i32, i32, i32
  }
  func.func @transform_2(%arg0: i32, %arg1: i32) -> (i32, i32, i32) {
    %c0_i32 = arith.constant 0 : i32
    %c0_i32_0 = arith.constant 0 : i32
    return %arg0, %c0_i32, %arg1 : i32, i32, i32
  }
  func.func @transform_3(%arg0: i32, %arg1: i32) -> (i32, i32, i32) {
    %c0_i32 = arith.constant 0 : i32
    %c0_i32_0 = arith.constant 0 : i32
    return %arg0, %c0_i32, %arg1 : i32, i32, i32
  }
}

module attributes {stable_mosaic.version = 11 : i64} {
  func.func @_select_mean_kernel(%arg0: i32, %arg1: i32, %arg2: memref<1xi32, #tpu.memory_space<smem>>, %arg3: memref<1x1x256xf32, #tpu.memory_space<vmem>>, %arg4: memref<1x1x256xi32, #tpu.memory_space<vmem>>, %arg5: memref<1x1x128xf32, #tpu.memory_space<vmem>>, %arg6: memref<1x1x128xf32, #tpu.memory_space<vmem>>) attributes {dimension_semantics = [#tpu.dimension_semantics<parallel>, #tpu.dimension_semantics<arbitrary>], iteration_bounds = array<i64: 2, 1>, scalar_prefetch = 1 : i64, scratch_operands = 0 : i64, tpu.core_type = #tpu.core_type<tc>, window_params = [{transform_indices = @transform_0, window_bounds = array<i64: 1, 1, 256>}, {transform_indices = @transform_1, window_bounds = array<i64: 1, 1, 256>}, {transform_indices = @transform_2, window_bounds = array<i64: 1, 1, 128>}, {transform_indices = @transform_3, window_bounds = array<i64: 1, 1, 128>}]} {
    %c0_i32 = arith.constant 0 : i32
    %0 = arith.cmpi eq, %arg1, %c0_i32 : i32
    %1 = arith.extui %0 : i1 to i32
    %c0_i32_0 = arith.constant 0 : i32
    %2 = arith.cmpi ne, %1, %c0_i32_0 : i32
    scf.if %2 {
      %cst_21 = arith.constant 0.000000e+00 : f32
      %28 = vector.broadcast %cst_21 : f32 to vector<1x1x128xf32>
      %c0_22 = arith.constant 0 : index
      %c0_23 = arith.constant 0 : index
      %c0_24 = arith.constant 0 : index
      %29 = vector.load %arg5[%c0_22, %c0_23, %c0_24] : memref<1x1x128xf32, #tpu.memory_space<vmem>>, vector<1x1x128xf32>
      tpu.vector_store %arg5[%c0_22, %c0_23, %c0_24], %28 {strides = array<i32>} : memref<1x1x128xf32, #tpu.memory_space<vmem>>, vector<1x1x128xf32>,
      %cst_25 = arith.constant 0.000000e+00 : f32
      %30 = vector.broadcast %cst_25 : f32 to vector<1x1x128xf32>
      %c0_26 = arith.constant 0 : index
      %c0_27 = arith.constant 0 : index
      %c0_28 = arith.constant 0 : index
      %31 = vector.load %arg6[%c0_26, %c0_27, %c0_28] : memref<1x1x128xf32, #tpu.memory_space<vmem>>, vector<1x1x128xf32>
      tpu.vector_store %arg6[%c0_26, %c0_27, %c0_28], %30 {strides = array<i32>} : memref<1x1x128xf32, #tpu.memory_space<vmem>>, vector<1x1x128xf32>,
    } else {
    }
    %c0 = arith.constant 0 : index
    %3 = memref.load %arg2[%c0] : memref<1xi32, #tpu.memory_space<smem>>
    %c0_1 = arith.constant 0 : index
    %c0_2 = arith.constant 0 : index
    %c0_3 = arith.constant 0 : index
    %4 = vector.load %arg4[%c0_1, %c0_2, %c0_3] : memref<1x1x256xi32, #tpu.memory_space<vmem>>, vector<1x1x256xi32>
    %5 = vector.broadcast %3 : i32 to vector<1x1x256xi32>
    %6 = arith.cmpi slt, %4, %5 : vector<1x1x256xi32>
    %c0_4 = arith.constant 0 : index
    %c0_5 = arith.constant 0 : index
    %c0_6 = arith.constant 0 : index
    %7 = vector.load %arg5[%c0_4, %c0_5, %c0_6] : memref<1x1x128xf32, #tpu.memory_space<vmem>>, vector<1x1x128xf32>
    %c0_7 = arith.constant 0 : index
    %c0_8 = arith.constant 0 : index
    %c0_9 = arith.constant 0 : index
    %8 = vector.load %arg3[%c0_7, %c0_8, %c0_9] : memref<1x1x256xf32, #tpu.memory_space<vmem>>, vector<1x1x256xf32>
    %cst = arith.constant 0.000000e+00 : f32
    %9 = vector.broadcast %cst : f32 to vector<1x1x256xf32>
    %10 = arith.select %6, %8, %9 : vector<1x1x256xi1>, vector<1x1x256xf32>
    %11 = vector.shape_cast %10 : vector<1x1x256xf32> to vector<1x1x1x256xf32>
    %cst_10 = arith.constant dense<0.000000e+00> : vector<1xf32>
    %12 = vector.multi_reduction <add>, %11, %cst_10 [1, 2, 3] : vector<1x1x1x256xf32> to vector<1xf32>
    %13 = vector.shape_cast %12 : vector<1xf32> to vector<1x1x1x1xf32>
    %14 = vector.extract %13[0, 0, 0, 0] : f32 from vector<1x1x1x1xf32>
    %15 = vector.broadcast %14 : f32 to vector<1x1x128xf32>
    %16 = arith.addf %7, %15 : vector<1x1x128xf32>
    %c0_11 = arith.constant 0 : index
    %c0_12 = arith.constant 0 : index
    %c0_13 = arith.constant 0 : index
    %17 = vector.load %arg5[%c0_11, %c0_12, %c0_13] : memref<1x1x128xf32, #tpu.memory_space<vmem>>, vector<1x1x128xf32>
    tpu.vector_store %arg5[%c0_11, %c0_12, %c0_13], %16 {strides = array<i32>} : memref<1x1x128xf32, #tpu.memory_space<vmem>>, vector<1x1x128xf32>,
    %c0_14 = arith.constant 0 : index
    %c0_15 = arith.constant 0 : index
    %c0_16 = arith.constant 0 : index
    %18 = vector.load %arg6[%c0_14, %c0_15, %c0_16] : memref<1x1x128xf32, #tpu.memory_space<vmem>>, vector<1x1x128xf32>
    %19 = arith.extui %6 : vector<1x1x256xi1> to vector<1x1x256xi32>
    %20 = arith.sitofp %19 : vector<1x1x256xi32> to vector<1x1x256xf32>
    %21 = vector.shape_cast %20 : vector<1x1x256xf32> to vector<1x1x1x256xf32>
    %cst_17 = arith.constant dense<0.000000e+00> : vector<1xf32>
    %22 = vector.multi_reduction <add>, %21, %cst_17 [1, 2, 3] : vector<1x1x1x256xf32> to vector<1xf32>
    %23 = vector.shape_cast %22 : vector<1xf32> to vector<1x1x1x1xf32>
    %24 = vector.extract %23[0, 0, 0, 0] : f32 from vector<1x1x1x1xf32>
    %25 = vector.broadcast %24 : f32 to vector<1x1x128xf32>
    %26 = arith.addf %18, %25 : vector<1x1x128xf32>
    %c0_18 = arith.constant 0 : index
    %c0_19 = arith.constant 0 : index
    %c0_20 = arith.constant 0 : index
    %27 = vector.load %arg6[%c0_18, %c0_19, %c0_20] : memref<1x1x128xf32, #tpu.memory_space<vmem>>, vector<1x1x128xf32>
    tpu.vector_store %arg6[%c0_18, %c0_19, %c0_20], %26 {strides = array<i32>} : memref<1x1x128xf32, #tpu.memory_space<vmem>>, vector<1x1x128xf32>,
    return
  }
  func.func @transform_0(%arg0: i32, %arg1: i32, %arg2: memref<1xi32, #tpu.memory_space<smem>>) -> (i32, i32, i32) {
    %c0_i32 = arith.constant 0 : i32
    %c0_i32_0 = arith.constant 0 : i32
    return %arg0, %c0_i32, %arg1 : i32, i32, i32
  }
  func.func @transform_1(%arg0: i32, %arg1: i32, %arg2: memref<1xi32, #tpu.memory_space<smem>>) -> (i32, i32, i32) {
    %c0_i32 = arith.constant 0 : i32
    %c0_i32_0 = arith.constant 0 : i32
    return %arg0, %c0_i32, %arg1 : i32, i32, i32
  }
  func.func @transform_2(%arg0: i32, %arg1: i32, %arg2: memref<1xi32, #tpu.memory_space<smem>>) -> (i32, i32, i32) {
    %c0_i32 = arith.constant 0 : i32
    %c0_i32_0 = arith.constant 0 : i32
    %c0_i32_1 = arith.constant 0 : i32
    return %arg0, %c0_i32, %c0_i32_0 : i32, i32, i32
  }
  func.func @transform_3(%arg0: i32, %arg1: i32, %arg2: memref<1xi32, #tpu.memory_space<smem>>) -> (i32, i32, i32) {
    %c0_i32 = arith.constant 0 : i32
    %c0_i32_0 = arith.constant 0 : i32
    %c0_i32_1 = arith.constant 0 : i32
    return %arg0, %c0_i32, %c0_i32_0 : i32, i32, i32
  }
}

</mosaic_0001>

<bundles_post_ra>
// kernel: ohem_cross_entropy_forward.3
= control target key start
LH: loop header
LB: loop body
LE: loop exit
PB: predicated region body
PF: predicated region fallthrough
CT: control target
= control target key end

     0   :  { %s495_s17 = smov 0   ;;  %s497_s18 = smov 0   ;;  %s539_s0 = inlined_call_operand.<no memory space> [shape: s32[1], index: 0, kind: input, shape index: {}]   ;;  %s540_s1 = inlined_call_operand.vmem [shape: f32[2,1,256], index: 1, kind: input, shape index: {}]   ;;  %s541_s2 = inlined_call_operand.vmem [shape: s32[2,1,256], index: 2, kind: input, shape index: {}]   ;;  %s542_s3 = inlined_call_operand.vmem [shape: f32[2,1,128], index: 3, kind: output, shape index: {0}]   ;;  %s543_s4 = inlined_call_operand.vmem [shape: f32[2,1,128], index: 4, kind: output, shape index: {1}]  }
   0x1   :  { %10 = sst [smem:[#allocation3]] %s539_s0  ;;  %s499_s19 = smov 0  }
   0x2 LB: > { %s28_s0 = sadd.s32 1, %s460_s18  ;;  %p407_p0 = scmp.ge.s32.totalorder %s464_s19, 1  ;;  %s464_s19 = sphi %s499_s19, %s16_s19   ;;  %s460_s18 = sphi %s497_s18, %s545_s18   ;;  %s456_s17 = sphi %s495_s17, %s544_s17  }
   0x3   : > { %p30_p1 = scmp.ge.s32.totalorder %s28_s0, 2  ;;  %p176_p2 = scmp.lt.s32.totalorder %s464_s19, 3 }
   0x5   : > { %s547_s0 = smov (%p30_p1, %s28_s0), 0  ;;  %p177_p3 = pnand %p407_p0, %p176_p2 }
   0x6   : > { %p213_p4 = scmp.lt.s32.totalorder (!%p177_p3), %s456_s17, 1  ;;  %s242_s20 = sld [smem:[#allocation3]] (!%p177_p3)  ;;  %v250_v0 = vlaneseq (!%p177_p3)  ;;  %vm260_vm1 = vcmask (!%p177_p3), 1040384   ;;  %v466_v8 = vmov (!%p177_p3), 0.0  }
   0x7   : > { %180 = sbr.rel (%p177_p3) target bundleno = 237 (0xed), region = 28 }
   0x8   : > { %v251_v1 = vshrl.u32 (!%p177_p3), %v250_v0, 7 }
   0xa   : > { %v252_v2 = vsub.s32 (!%p177_p3), 0, %v251_v1  ;;  %v256_v3 = vsub.s32 (!%p177_p3), 1, %v251_v1 }
   0xc   : > { %v244_v5 = vstv (!%p177_p3), %s242_s20 }
   0xe   : > { %s549_s17 = smov (!%p213_p4, %s456_s17), 1 }
   0xf   : > { %s408_s21 = sshll.u32 %s549_s17, 1  ;;  %s232_s30 = scalar_lea.vmem %s542_s3, %s549_s17 }
  0x10   : > { %s219_s24 = scalar_lea.vmem %s540_s1, %s408_s21  ;;  %s228_s27 = scalar_lea.vmem %s541_s2, %s408_s21  ;;  %240 = vst [vmem:[%s232_s30] sm:$0x1] %v466_v8 }
  0x11   : > { %v243_v4 = vld [vmem:[%s228_s27] sm:$0x3]  ;;  %s235_s7 = scalar_lea.vmem %s543_s4, %s549_s17 }
  0x12   : > { %v247_v6 = vld [vmem:[%s219_s24] sm:$0x3]  ;;  %vm245_vm0 = vcmp.lt.s32.totalorder %v243_v4, %v244_v5  ;;  %241 = vst [vmem:[%s235_s7] sm:$0x1] %v466_v8 }
  0x13   : > { %v248_v7 = vsel %vm245_vm0, %v247_v6, 0.0  ;;  %v410_v9 = vsel %vm245_vm0, 1.0, %v466_v8 }
  0x14   : > { %v253_v10 = vrot.slane %v248_v7, %v252_v2  ;;  %v257_v11 = vrot.slane %v248_v7, %v256_v3  ;;  %v283_v12 = vrot.slane %v410_v9, %v252_v2  ;;  %v287_v13 = vrot.slane %v410_v9, %v256_v3 }
  0x16   : > { %v261_v14 = vsel %vm260_vm1, %v253_v10, 0.0  ;;  %v262_v15 = vsel %vm260_vm1, %v257_v11, 0.0  ;;  %v290_v16 = vsel %vm260_vm1, %v283_v12, 0.0  ;;  %v291_v17 = vsel %vm260_vm1, %v287_v13, 0.0 }
  0x17   : > { %v263_v18 = vadd.f32 %v262_v15, %v261_v14  ;;  %v292_v19 = vadd.f32 %v291_v17, %v290_v16  ;;  %v246_v34 = vld [vmem:[%s232_s30] sm:$0x1] }
  0x19   : > { %264 = vadd.xlane.f32.xlu0 %v263_v18  ;;  %v276_v37 = vld [vmem:[%s235_s7] sm:$0x1] }
  0x1d   : > { %293 = vadd.xlane.f32.xlu0 %v292_v19 }
  0xa6   : > { %v265_v20 = vpop.xlane.xlu0 %264 }
  0xa7   : > { %v266_v21 = vrot.slane %v265_v20, 4 }
  0xa9   : > { %v267_v22 = vadd.f32 %v266_v21, %v265_v20 }
  0xaa   : > { %v294_v23 = vpop.xlane.xlu0 %293 }
  0xab   : > { %v268_v24 = vrot.slane %v267_v22, 2  ;;  %v295_v25 = vrot.slane %v294_v23, 4 }
  0xad   : > { %v296_v26 = vadd.f32 %v295_v25, %v294_v23  ;;  %v269_v27 = vadd.f32 %v268_v24, %v267_v22 }
  0xaf   : > { %v297_v28 = vrot.slane %v296_v26, 2  ;;  %v270_v29 = vrot.slane %v269_v27, 1 }
  0xb1   : > { %v298_v30 = vadd.f32 %v297_v28, %v296_v26  ;;  %v271_v31 = vadd.f32 %v270_v29, %v269_v27 }
  0xb3   : > { %413 = vpush %v271_v31  ;;  %v299_v32 = vrot.slane %v298_v30, 1 }
  0xb5   : > { %v300_v33 = vadd.f32 %v299_v32, %v298_v30 }
  0xb7   : > { %415 = vpush %v300_v33 }
  0xe4   : > { %s414_s8 = spop %413 }
  0xe5   : > { %v273_v35 = vstv %s414_s8 }
  0xe6   : > { %v274_v36 = vadd.f32 %v273_v35, %v246_v34 }
  0xe8   : > { %275 = vst [vmem:[%s232_s30] sm:$0x1] %v274_v36  ;;  %s416_s9 = spop %415 }
  0xe9   : > { %v302_v38 = vstv %s416_s9 }
  0xea   : > { %v303_v39 = vadd.f32 %v302_v38, %v276_v37 }
  0xec   : > { %304 = vst [vmem:[%s235_s7] sm:$0x1] %v303_v39 }
  0xed PF: > { %s16_s19 = sadd.s32 1, %s464_s19   ;;  %s544_s17 = smov %s460_s18 }
  0xee   : > { %p13_p5 = scmp.ge.s32.totalorder %s16_s19, 4   ;;  %s545_s18 = smov %s547_s0 }
  0xf0   :  { %15 = sbr.rel (!%p13_p5) target bundleno = 2 (0x2), region = 77 }

// kernel: ohem_cross_entropy_forward.2
= control target key start
LH: loop header
LB: loop body
LE: loop exit
PB: predicated region body
PF: predicated region fallthrough
CT: control target
= control target key end

     0   :  { %s629_s12 = smov 0   ;;  %s631_s13 = smov 0   ;;  %s691_s0 = inlined_call_operand.vmem [shape: f32[2,4,256], index: 0, kind: input, shape index: {}]   ;;  %s692_s1 = inlined_call_operand.vmem [shape: s32[2,1,256], index: 1, kind: input, shape index: {}]   ;;  %s693_s2 = inlined_call_operand.vmem [shape: f32[2,1,256], index: 2, kind: output, shape index: {0}]   ;;  %s694_s3 = inlined_call_operand.vmem [shape: s32[2,1,256], index: 3, kind: output, shape index: {1}]  }
   0x1   :  { %s633_s14 = smov 0  }
   0x2 LB: > { %s26_s15 = sadd.s32 1, %s602_s13  ;;  %p539_p0 = scmp.ge.s32.totalorder %s606_s14, 1  ;;  %s606_s14 = sphi %s633_s14, %s14_s14   ;;  %s602_s13 = sphi %s631_s13, %s696_s13   ;;  %s598_s12 = sphi %s629_s12, %s695_s12  }
   0x3   : > { %p28_p1 = scmp.ge.s32.totalorder %s26_s15, 2  ;;  %p179_p2 = scmp.lt.s32.totalorder %s606_s14, 3 }
   0x5   : > { %s698_s15 = smov (%p28_p1, %s26_s15), 0  ;;  %p180_p3 = pnand %p539_p0, %p179_p2 }
   0x6   : > { %p227_p4 = scmp.lt.s32.totalorder (!%p180_p3), %s598_s12, 1  ;;  %vm282_vm0 = vcmask (!%p180_p3), 1043456   ;;  %v267_v11 = vlaneseq (!%p180_p3)  ;;  %v608_v58 = vmov (!%p180_p3), 1966171168  }
   0x7   : > { %183 = sbr.rel (%p180_p3) target bundleno = 103 (0x67), region = 28  ;;  %v358_v59 = vunpack.c.l.s4 (!%p180_p3), %v608_v58 }
   0x8   : > { %v268_v17 = vshrl.u32 (!%p180_p3), %v267_v11, 7  ;;  %vm375_vm4 = vcmp.lt.s32.totalorder (!%p180_p3), %v267_v11, 256 }
   0xa   : > { %v271_v20 = vsub.s32 (!%p180_p3), 0, %v268_v17  ;;  %v275_v23 = vsub.s32 (!%p180_p3), 1, %v268_v17 }
   0xe   : > { %s700_s12 = smov (!%p227_p4, %s598_s12), 1 }
   0xf   : > { %s547_s16 = sshll.u32 %s700_s12, 3  ;;  %s652_s20 = sshll.u32 %s700_s12, 1 }
  0x10   : > { %s234_s19 = scalar_lea.vmem %s691_s0, %s547_s16  ;;  %s243_s23 = scalar_lea.vmem %s692_s1, %s652_s20 }
  0x11   : > { %v263_v0 = vld [vmem:[%s234_s19] sm:$0xff]  ;;  %s252_s26 = scalar_lea.vmem %s693_s2, %s652_s20  ;;  %s261_s29 = scalar_lea.vmem %s694_s3, %s652_s20 }
  0x12   : > { %v280_v1 = vcombine.high %v263_v0, %v263_v0  ;;  %v283_v2 = vsel %vm282_vm0, %v263_v0, -inf  ;;  %v658_v16 = vld [vmem:[%s243_s23] sm:$0x3] }
  0x13   : > { %v284_v3 = vrot.slane %v283_v2, 4  ;;  %vm265_vm1 = vcmp.ne.s32.totalorder %v658_v16, 4294967295 }
  0x14   : > { %v290_v4 = vsel %vm282_vm0, %v280_v1, -inf  ;;  %v266_v22 = vsel %vm265_vm1, %v658_v16, 0 }
  0x15   : > { %v285_v5 = vmax.f32 %v283_v2, %v284_v3  ;;  %v291_v6 = vrot.slane %v290_v4, 4  ;;  %v272_v25 = vrot.slane %v266_v22, %v271_v20  ;;  %v276_v26 = vrot.slane %v266_v22, %v275_v23 }
  0x17   : > { %v286_v7 = vrot.slane %v285_v5, 2  ;;  %v292_v8 = vmax.f32 %v290_v4, %v291_v6  ;;  %vm277_vm2 = vcmp.eq.s32.totalorder %v268_v17, %v272_v25  ;;  %vm278_vm3 = vcmp.eq.s32.totalorder %v268_v17, %v276_v26 }
  0x19   : > { %v287_v9 = vmax.f32 %v285_v5, %v286_v7  ;;  %v293_v10 = vrot.slane %v292_v8, 2 }
  0x1b   : > { %v288_v12 = vrot.slane %v287_v9, 1  ;;  %v294_v13 = vmax.f32 %v292_v8, %v293_v10 }
  0x1d   : > { %v289_v14 = vmax.f32 %v287_v9, %v288_v12  ;;  %v295_v15 = vrot.slane %v294_v13, 1 }
  0x1f   : > { %v296_v18 = vmax.f32 %v294_v13, %v295_v15 }
  0x21   : > { %v299_v19 = vcombine.low %v289_v14, %v296_v18 }
  0x23   : > { %v301_v21 = vsub.f32 %v263_v0, %v299_v19  ;;  %v359_v0 = vunpack.c.0.s8 %v358_v59 }
  0x25   : > { %v302_v24 = vmul.f32 1.442695, %v301_v21  ;;  %v322_v27 = vcombine.high %v301_v21, %v301_v21  ;;  %v324_v28 = vsel %vm277_vm2, %v301_v21, 0.0  ;;  %v362_v6 = vsub.s32 %v359_v0, %v268_v17 }
  0x26   : > { %v326_v31 = vsel %vm282_vm0, %v324_v28, 0.0 }
  0x27   : > { %574 = vpow2.f32 %v302_v24  ;;  %v325_v29 = vsel %vm278_vm3, %v322_v27, 0.0  ;;  %v327_v37 = vrot.slane %v326_v31, 4 }
  0x28   : > { %v333_v35 = vsel %vm282_vm0, %v325_v29, 0.0 }
  0x29   : > { %v334_v40 = vrot.slane %v333_v35, 4  ;;  %v328_v43 = vadd.f32 %v327_v37, %v326_v31 }
  0x2b   : > { %v335_v46 = vadd.f32 %v334_v40, %v333_v35  ;;  %v329_v49 = vrot.slane %v328_v43, 2 }
  0x2d   : > { %v336_v52 = vrot.slane %v335_v46, 2  ;;  %v330_v54 = vadd.f32 %v329_v49, %v328_v43 }
  0x2f   : > { %v337_v55 = vadd.f32 %v336_v52, %v335_v46  ;;  %v331_v56 = vrot.slane %v330_v54, 1 }
  0x31   : > { %v575_v30 = vpop.eup %574  ;;  %v338_v57 = vrot.slane %v337_v55, 1  ;;  %v332_v60 = vadd.f32 %v331_v56, %v330_v54 }
  0x32   : > { %v305_v32 = vcombine.high %v575_v30, %v575_v30  ;;  %v307_v33 = vsel %vm282_vm0, %v575_v30, 0.0 }
  0x33   : > { %v308_v34 = vrot.slane %v307_v33, 4  ;;  %v339_v62 = vadd.f32 %v338_v57, %v337_v55 }
  0x34   : > { %v314_v36 = vsel %vm282_vm0, %v305_v32, 0.0 }
  0x35   : > { %v309_v38 = vadd.f32 %v308_v34, %v307_v33  ;;  %v315_v39 = vrot.slane %v314_v36, 4 }
  0x37   : > { %v310_v41 = vrot.slane %v309_v38, 2  ;;  %v316_v42 = vadd.f32 %v315_v39, %v314_v36 }
  0x39   : > { %v311_v44 = vadd.f32 %v310_v41, %v309_v38  ;;  %v317_v45 = vrot.slane %v316_v42, 2 }
  0x3b   : > { %v312_v47 = vrot.slane %v311_v44, 1  ;;  %v318_v48 = vadd.f32 %v317_v45, %v316_v42 }
  0x3d   : > { %v313_v50 = vadd.f32 %v312_v47, %v311_v44  ;;  %v319_v51 = vrot.slane %v318_v48, 1 }
  0x3f   : > { %v320_v53 = vadd.f32 %v319_v51, %v318_v48  ;;  %576 = vlog2.f32 %v313_v50 }
  0x41   : > { %578 = vlog2.f32 %v320_v53 }
  0x49   : > { %v577_v61 = vpop.eup %576 }
  0x4a   : > { %v341_v63 = vmul.f32 0.6931472, %v577_v61 }
  0x4b   : > { %v579_v1 = vpop.eup %578 }
  0x4c   : > { %v343_v2 = vmul.f32 0.6931472, %v579_v1  ;;  %v344_v3 = vsub.f32 %v341_v63, %v332_v60 }
  0x4e   : > { %v345_v4 = vsub.f32 %v343_v2, %v339_v62  ;;  %v346_v5 = vsub.f32 0.0, %v344_v3 }
  0x50   : > { %v347_v7 = vsub.f32 0.0, %v345_v4  ;;  %v348_v8 = vmul.f32 1.442695, %v346_v5  ;;  %v356_v9 = vcombine.low %v344_v3, %v345_v4 }
  0x52   : > { %580 = vpow2.f32 %v348_v8  ;;  %v350_v10 = vmul.f32 1.442695, %v347_v7  ;;  %v363_v12 = vrot.slane %v356_v9, %v362_v6 }
  0x54   : > { %582 = vpow2.f32 %v350_v10  ;;  %v370_v13 = vrot.slane %v363_v12, %v362_v6 }
  0x56   : > { %v372_v14 = vsel %vm265_vm1, %v370_v13, 0.0 }
  0x57   : > { %377 = vst.msk [vmem:[%s252_s26] sm:$0x3] %vm375_vm4, %v372_v14 }
  0x5c   : > { %v581_v15 = vpop.eup %580 }
  0x5e   : > { %v583_v17 = vpop.eup %582 }
  0x5f   : > { %v378_v18 = vcombine.low %v581_v15, %v583_v17 }
  0x61   : > { %v385_v19 = vrot.slane %v378_v18, %v362_v6 }
  0x63   : > { %v392_v20 = vrot.slane %v385_v19, %v362_v6 }
  0x65   : > { %v393_v21 = vsel %vm265_vm1, %v392_v20, 1073741824 }
  0x66   : > { %394 = vst.msk [vmem:[%s261_s29] sm:$0x3] %vm375_vm4, %v393_v21 }
  0x67 PF: > { %s14_s14 = sadd.s32 1, %s606_s14   ;;  %s695_s12 = smov %s602_s13 }
  0x68   : > { %p11_p5 = scmp.ge.s32.totalorder %s14_s14, 4   ;;  %s696_s13 = smov %s698_s15 }
  0x6a   :  { %13 = sbr.rel (!%p11_p5) target bundleno = 2 (0x2), region = 73 }

</bundles_post_ra>
